<compile_context>
chip_gen: v5e
topology: v5e:2x2
jax: 0.10.0
libtpu: 0.0.40
codegen_flags: <defaults>
</compile_context>

<pallas_src>
import functools

import jax
import jax.numpy as jnp
from jax.experimental import pallas as pl
from jax.experimental.pallas import tpu as pltpu

EPS = 1e-5          # nn.BatchNorm1d default eps
LANES = 128         # lane-dense padded width for hidden / output features
D_IN, D_HID, D_OUT = 10, 10, 2

# Packed-parameter row layout (offsets chosen so the big W2 slice is
# 8-row aligned):
#   rows   0:10   -> W1 (10 x 10) in cols 0:10, zeros elsewhere
#   row    10     -> gamma (10,)  in cols 0:10
#   row    11     -> beta  (10,)  in cols 0:10
#   row    12     -> b2    (2,)   in cols 0:2
#   rows  13:16   -> zero padding
#   rows  16:144  -> W2 (10 x 2) at [16:26, 0:2], zeros elsewhere (128 x 128)
_P_ROWS = 144
_W2_ROW0 = 16


def pack_params(w1, gamma, beta, w2, b2):
    """Pack all per-feature parameters into one (144, 128) VMEM-friendly slab.

    Do this ONCE at parameter-load time (pure XLA scatter work); the jitted
    forward then takes the packed slab directly."""
    p = jnp.zeros((_P_ROWS, LANES), dtype=jnp.float32)
    p = p.at[0:D_IN, 0:D_HID].set(w1.astype(jnp.float32))
    p = p.at[10, 0:D_HID].set(gamma.reshape(-1).astype(jnp.float32))
    p = p.at[11, 0:D_HID].set(beta.reshape(-1).astype(jnp.float32))
    p = p.at[12, 0:D_OUT].set(b2.reshape(-1).astype(jnp.float32))
    p = p.at[_W2_ROW0:_W2_ROW0 + D_HID, 0:D_OUT].set(w2.astype(jnp.float32))
    return p


def predictor_pef_kernel(x_ref, p_ref, o_ref):
    x = x_ref[...]                                   # (B, 10)

    w1 = p_ref[0:D_IN, :]                            # (10, 128): hid on lanes
    gamma = p_ref[10:11, :]                          # (1, 128)
    beta = p_ref[11:12, :]                           # (1, 128)
    b2 = p_ref[12:13, :]                             # (1, 128)
    w2 = p_ref[_W2_ROW0:_W2_ROW0 + LANES, :]         # (128, 128), zero-padded

    # fc1 (bias folded out -- cancelled exactly by the BN mean subtraction)
    h = jnp.dot(x, w1, preferred_element_type=jnp.float32)      # (B, 128)

    # BatchNorm1d, training mode (biased batch variance), fused affine.
    mean = jnp.mean(h, axis=0, keepdims=True)                    # (1, 128)
    c = h - mean
    var = jnp.mean(c * c, axis=0, keepdims=True)                 # (1, 128)
    scale = gamma * jax.lax.rsqrt(var + EPS)                     # (1, 128)

    # ReLU fused with the affine.  Padded lanes (gamma=beta=0) stay exactly 0.
    y = jnp.maximum(c * scale + beta, 0.0)                       # (B, 128)

    # fc2: lane-dense (B, 128) output; columns 2:128 are exactly zero + b2 pad.
    o_ref[...] = jnp.dot(y, w2, preferred_element_type=jnp.float32) + b2


@functools.partial(jax.jit, static_argnames=())
def _forward(x, packed):
    """Jitted forward over the pre-packed parameter slab."""
    B = x.shape[0]
    vmem_spec = pl.BlockSpec(memory_space=pltpu.MemorySpace.VMEM)
    out_pad = pl.pallas_call(
        predictor_pef_kernel,
        out_shape=jax.ShapeDtypeStruct((B, LANES), jnp.float32),
        in_specs=[vmem_spec, vmem_spec],
        out_specs=vmem_spec,
    )(x.astype(jnp.float32), packed)
    # Slice the lane-dense padded output back to the real 2 output features.
    return out_pad[:, :D_OUT]


def predictor_pef(x, w1, b1, gamma, beta, w2, b2):
    """API-parity wrapper mirroring the PyTorch module's parameters.

    b1 is mathematically a no-op under training-mode BN (the batch-mean
    subtraction cancels it exactly) and is therefore never sent to the kernel.
    For repeated calls, prefer pack_params(...) once + _forward(x, packed)."""
    del b1
    return _forward(x, pack_params(w1, gamma, beta, w2, b2))


def reference(x, w1, b1, gamma, beta, w2, b2):
    h = x @ w1 + b1
    mean = h.mean(axis=0, keepdims=True)
    var = ((h - mean) ** 2).mean(axis=0, keepdims=True)
    y = gamma * (h - mean) / jnp.sqrt(var + EPS) + beta
    y = jnp.maximum(y, 0.0)
    return y @ w2 + b2


if __name__ == "__main__":
    key = jax.random.PRNGKey(0)
    kx, kw1, kb1, kw2, kb2 = jax.random.split(key, 5)

    B = 8

    x = jax.random.normal(kx, (B, D_IN), dtype=jnp.float32)

    # Deterministic synthetic parameters (matching the module's shapes).
    w1 = jax.random.normal(kw1, (D_IN, D_HID), dtype=jnp.float32) * 0.3
    b1 = jax.random.normal(kb1, (D_HID,), dtype=jnp.float32) * 0.1
    gamma = jnp.ones((D_HID,), dtype=jnp.float32)   # bn1.weight init
    beta = jnp.zeros((D_HID,), dtype=jnp.float32)   # bn1.bias init
    w2 = jax.random.normal(kw2, (D_HID, D_OUT), dtype=jnp.float32) * 0.3
    b2 = jax.random.normal(kb2, (D_OUT,), dtype=jnp.float32) * 0.1

    # Pack once (parameter-load time), then run the jitted forward.
    packed = pack_params(w1, gamma, beta, w2, b2)
    out = _forward(x, packed)
    out = jax.block_until_ready(out)

    # Parity wrapper path (packs on the fly) must agree too.
    out2 = jax.block_until_ready(predictor_pef(x, w1, b1, gamma, beta, w2, b2))

    ref = reference(x, w1, b1, gamma, beta, w2, b2)
    assert out.shape == (B, D_OUT), out.shape
    assert jnp.allclose(out, ref, atol=1e-4, rtol=1e-4), (out, ref)
    assert jnp.allclose(out2, ref, atol=1e-4, rtol=1e-4), (out2, ref)

    print("KERNEL_OK")
</pallas_src>

<mosaic_0001>
module attributes {stable_mosaic.version = 11 : i64} {
  func.func @predictor_pef_kernel(%arg0: memref<8x10xf32, #tpu.memory_space<vmem>>, %arg1: memref<144x128xf32, #tpu.memory_space<vmem>>, %arg2: memref<8x128xf32, #tpu.memory_space<vmem>>) attributes {dimension_semantics = [], scalar_prefetch = 0 : i64, scratch_operands = 0 : i64, tpu.core_type = #tpu.core_type<tc>} {
    %c0 = arith.constant 0 : index
    %c0_0 = arith.constant 0 : index
    %0 = vector.load %arg0[%c0, %c0_0] : memref<8x10xf32, #tpu.memory_space<vmem>>, vector<8x10xf32>
    %c0_1 = arith.constant 0 : index
    %c0_2 = arith.constant 0 : index
    %1 = vector.load %arg1[%c0_1, %c0_2] : memref<144x128xf32, #tpu.memory_space<vmem>>, vector<10x128xf32>
    %c10 = arith.constant 10 : index
    %c0_3 = arith.constant 0 : index
    %2 = vector.load %arg1[%c10, %c0_3] : memref<144x128xf32, #tpu.memory_space<vmem>>, vector<1x128xf32>
    %c11 = arith.constant 11 : index
    %c0_4 = arith.constant 0 : index
    %3 = vector.load %arg1[%c11, %c0_4] : memref<144x128xf32, #tpu.memory_space<vmem>>, vector<1x128xf32>
    %c12 = arith.constant 12 : index
    %c0_5 = arith.constant 0 : index
    %4 = vector.load %arg1[%c12, %c0_5] : memref<144x128xf32, #tpu.memory_space<vmem>>, vector<1x128xf32>
    %c16 = arith.constant 16 : index
    %c0_6 = arith.constant 0 : index
    %5 = vector.load %arg1[%c16, %c0_6] : memref<144x128xf32, #tpu.memory_space<vmem>>, vector<128x128xf32>
    %cst = arith.constant dense<0.000000e+00> : vector<8x128xf32>
    %6 = tpu.matmul %0, %1, %cst {dimension_numbers = #tpu.dot_dimension_numbers<[1], [0], [0], [1], [0, 0, 1, 1], [], []>} : vector<8x10xf32>, vector<10x128xf32>, vector<8x128xf32> -> vector<8x128xf32>
    %cst_7 = arith.constant dense<0.000000e+00> : vector<128xf32>
    %7 = vector.multi_reduction <add>, %6, %cst_7 [0] : vector<8x128xf32> to vector<128xf32>
    %8 = vector.shape_cast %7 : vector<128xf32> to vector<1x128xf32>
    %cst_8 = arith.constant 8.000000e+00 : f32
    %9 = vector.broadcast %cst_8 : f32 to vector<1x128xf32>
    %10 = arith.divf %8, %9 : vector<1x128xf32>
    %11 = vector.broadcast %10 : vector<1x128xf32> to vector<8x128xf32>
    %12 = arith.subf %6, %11 : vector<8x128xf32>
    %13 = arith.mulf %12, %12 : vector<8x128xf32>
    %cst_9 = arith.constant dense<0.000000e+00> : vector<128xf32>
    %14 = vector.multi_reduction <add>, %13, %cst_9 [0] : vector<8x128xf32> to vector<128xf32>
    %15 = vector.shape_cast %14 : vector<128xf32> to vector<1x128xf32>
    %cst_10 = arith.constant 8.000000e+00 : f32
    %16 = vector.broadcast %cst_10 : f32 to vector<1x128xf32>
    %17 = arith.divf %15, %16 : vector<1x128xf32>
    %cst_11 = arith.constant 9.99999974E-6 : f32
    %18 = vector.broadcast %cst_11 : f32 to vector<1x128xf32>
    %19 = arith.addf %17, %18 : vector<1x128xf32>
    %20 = math.rsqrt %19 : vector<1x128xf32>
    %21 = arith.mulf %2, %20 : vector<1x128xf32>
    %22 = vector.broadcast %21 : vector<1x128xf32> to vector<8x128xf32>
    %23 = arith.mulf %12, %22 : vector<8x128xf32>
    %24 = vector.broadcast %3 : vector<1x128xf32> to vector<8x128xf32>
    %25 = arith.addf %23, %24 : vector<8x128xf32>
    %cst_12 = arith.constant 0.000000e+00 : f32
    %26 = vector.broadcast %cst_12 : f32 to vector<8x128xf32>
    %27 = arith.maximumf %25, %26 : vector<8x128xf32>
    %cst_13 = arith.constant dense<0.000000e+00> : vector<8x128xf32>
    %28 = tpu.matmul %27, %5, %cst_13 {dimension_numbers = #tpu.dot_dimension_numbers<[1], [0], [0], [1], [0, 0, 1, 1], [], []>} : vector<8x128xf32>, vector<128x128xf32>, vector<8x128xf32> -> vector<8x128xf32>
    %29 = vector.broadcast %4 : vector<1x128xf32> to vector<8x128xf32>
    %30 = arith.addf %28, %29 : vector<8x128xf32>
    %c0_14 = arith.constant 0 : index
    %c0_15 = arith.constant 0 : index
    %31 = vector.load %arg2[%c0_14, %c0_15] : memref<8x128xf32, #tpu.memory_space<vmem>>, vector<8x128xf32>
    tpu.vector_store %arg2[%c0_14, %c0_15], %30 {strides = array<i32>} : memref<8x128xf32, #tpu.memory_space<vmem>>, vector<8x128xf32>,
    return
  }
}

</mosaic_0001>

<bundles_post_ra>
// kernel: _forward.1
= control target key start
LH: loop header
LB: loop body
LE: loop exit
PB: predicated region body
PF: predicated region fallthrough
CT: control target
= control target key end

     0   :  { %7 = vsyncpa [#allocation3], 0  ;;  %s253_s0 = inlined_call_operand.hbm [shape: f32[8,10], index: 0, kind: input, shape index: {}]   ;;  %s254_s1 = inlined_call_operand.hbm [shape: f32[144,128], index: 1, kind: input, shape index: {}]   ;;  %s255_s2 = inlined_call_operand.vmem [shape: f32[8,128], index: 2, kind: output, shape index: {}]  }
   0x1   :  { %s14_s11 = sshll.u32 %s253_s0, 4  ;;  %s15_s11 = int_to_ptr.hbm [resolvable:$true] %s14_s11 }
   0x2   :  { %8 = vsyncpa [#allocation5], 0  ;;  %s224_s12 = smov [#allocation2]   ;;  %s24_s16 = sshll.u32 %s254_s1, 4  ;;  %s25_s16 = int_to_ptr.hbm [resolvable:$true] %s24_s16 }
   0x3   :  { %s16_s13 = sshll.u32 %s224_s12, 4  ;;  %s225_s17 = smov [#allocation4]   ;;  %s17_s13 = int_to_ptr.vmem [resolvable:$true] %s16_s13 }
   0x4   :  { %19 = dma.hbm_to_vmem [thread:$0]  %s15_s11, 128, %s17_s13, [#allocation3]  }
   0x5   :  { %s26_s18 = sshll.u32 %s225_s17, 4  ;;  %s226_s19 = smov 128   ;;  %s27_s18 = int_to_ptr.vmem [resolvable:$true] %s26_s18 }
   0x6   :  { %s227_s20 = smov 8  }
   0x7   :  { %32 = dma.hbm_to_vmem [thread:$0]  %s25_s16, 2304, %s27_s18, [#allocation5], %s226_s19, %s226_s19, %s227_s20  }
   0x8   :  { %220 = dma.done.wait [#allocation3], 128  }
   0x9   :  { %221 = vsyncadd [#allocation3], 4294967168 }
   0xa   :  { %222 = dma.done.wait [#allocation5], 2304  }
   0xb   :  { %223 = vsyncadd [#allocation5], 4294964992  ;;  %vm67_vm0 = vcmask 1041408   ;;  %v43_v0 = vld [vmem:[#allocation4 + $0x8] sm:$0x3]  ;;  %v42_v1 = vld [vmem:[#allocation4] sm:$0xff] }
   0xc   :  { %159 = vmatpush.msk.msra.mxu0 %vm67_vm0, %v43_v0  ;;  %v41_v2 = vld [vmem:[#allocation2] sm:$0xff]  ;;  %vm63_vm1 = vcmask 80896   ;;  %v228_v3 = vmov 8.0   ;;  %v62_v7 = vld [vmem:[#allocation4 + $0x88] sm:$0xff]  ;;  %v61_v10 = vld [vmem:[#allocation4 + $0x80] sm:$0xff] }
   0xd   :  { %168 = vrcp.f32 %v228_v3  ;;  %132 = vmatpush.msra.mxu1 %v62_v7  ;;  %v60_v13 = vld [vmem:[#allocation4 + $0x78] sm:$0xff]  ;;  %v59_v15 = vld [vmem:[#allocation4 + $0x70] sm:$0xff]  ;;  %v58_v18 = vld [vmem:[#allocation4 + $0x68] sm:$0xff] }
   0xe   :  { %86 = vmatpush.msra.mxu0 %v42_v1  ;;  %v57_v20 = vld [vmem:[#allocation4 + $0x60] sm:$0xff]  ;;  %v56_v23 = vld [vmem:[#allocation4 + $0x58] sm:$0xff]  ;;  %v55_v25 = vld [vmem:[#allocation4 + $0x50] sm:$0xff] }
   0xf   :  { %160 = vmatmul.msk.f32.vlgmr.msra.gmra.mxu0 %vm63_vm1, %v41_v2  ;;  %133 = vmatpush.msra.mxu1 %v61_v10  ;;  %v54_v27 = vld [vmem:[#allocation4 + $0x48] sm:$0xff]  ;;  %v53_v29 = vld [vmem:[#allocation4 + $0x40] sm:$0xff]  ;;  %v52_v31 = vld [vmem:[#allocation4 + $0x38] sm:$0xff] }
  0x10   :  { %v51_v33 = vld [vmem:[#allocation4 + $0x30] sm:$0xff]  ;;  %v50_v35 = vld [vmem:[#allocation4 + $0x28] sm:$0xff]  ;;  %v49_v37 = vld [vmem:[#allocation4 + $0x20] sm:$0xff] }
  0x11   :  { %134 = vmatpush.msra.mxu1 %v60_v13  ;;  %v48_v38 = vld [vmem:[#allocation4 + $0x18] sm:$0xff]  ;;  %v47_v40 = vld [vmem:[#allocation4 + $0x10] sm:$0xff]  ;;  %v44_v49 = vld [vmem:[#allocation4 + $0xa] sm:$0x1] }
  0x12   :  { %v166_v54 = vld [vmem:[#allocation4 + $0xb] ss:$0 sm:$0xff]  ;;  %v167_v58 = vld [vmem:[#allocation4 + $0xc] ss:$0 sm:$0xff] }
  0x13   :  { %v169_v4 = vpop.eup %168  ;;  %135 = vmatpush.msra.mxu1 %v59_v15 }
  0x14   :  { %v98_v5 = vmul.f32 8.0, %v169_v4  ;;  %vm102_vm2 = vweird.f32 %v169_v4 }
  0x15   :  { %136 = vmatpush.msra.mxu1 %v58_v18 }
  0x16   :  { %v99_v6 = vsub.f32 1.0, %v98_v5 }
  0x17   :  { %137 = vmatpush.msra.mxu1 %v57_v20 }
  0x18   :  { %v100_v11 = vmul.f32 %v169_v4, %v99_v6 }
  0x19   :  { %138 = vmatpush.msra.mxu1 %v56_v23 }
  0x1a   :  { %v101_v16 = vadd.f32 %v169_v4, %v100_v11 }
  0x1b   :  { %139 = vmatpush.msra.mxu1 %v55_v25 }
  0x1c   :  { %v103_v21 = vsel %vm102_vm2, %v169_v4, %v101_v16 }
  0x1d   :  { %140 = vmatpush.msra.mxu1 %v54_v27 }
  0x1f   :  { %141 = vmatpush.msra.mxu1 %v53_v29 }
  0x21   :  { %142 = vmatpush.msra.mxu1 %v52_v31 }
  0x23   :  { %143 = vmatpush.msra.mxu1 %v51_v33 }
  0x25   :  { %144 = vmatpush.msra.mxu1 %v50_v35 }
  0x27   :  { %145 = vmatpush.msra.mxu1 %v49_v37 }
  0x29   :  { %146 = vmatpush.msra.mxu1 %v48_v38 }
  0x2b   :  { %147 = vmatpush.msra.mxu1 %v47_v40 }
  0x8c   :  { %v88_v8 = vpop.f32.mrf.mxu0 }
  0x8d   :  { %v91_v9 = vrot.slane %v88_v8, 4 }
  0x8f   :  { %v92_v12 = vadd.f32 %v91_v9, %v88_v8 }
  0x91   :  { %v93_v14 = vrot.slane %v92_v12, 2 }
  0x93   :  { %v94_v17 = vadd.f32 %v93_v14, %v92_v12 }
  0x95   :  { %v95_v19 = vrot.slane %v94_v17, 1 }
  0x97   :  { %v96_v22 = vadd.f32 %v95_v19, %v94_v17 }
  0x99   :  { %v104_v24 = vmul.f32 %v103_v21, %v96_v22 }
  0x9b   :  { %v105_v26 = vsub.f32 %v88_v8, %v104_v24 }
  0x9d   :  { %v106_v28 = vmul.f32 %v105_v26, %v105_v26 }
  0x9f   :  { %v107_v30 = vrot.slane %v106_v28, 4 }
  0xa1   :  { %v108_v32 = vadd.f32 %v107_v30, %v106_v28 }
  0xa3   :  { %v109_v34 = vrot.slane %v108_v32, 2 }
  0xa5   :  { %v110_v36 = vadd.f32 %v109_v34, %v108_v32 }
  0xa7   :  { %v111_v39 = vrot.slane %v110_v36, 1 }
  0xa9   :  { %v112_v41 = vadd.f32 %v111_v39, %v110_v36 }
  0xab   :  { %v113_v42 = vmul.f32 %v112_v41, %v103_v21 }
  0xad   :  { %v114_v43 = vadd.f32 1e-05, %v113_v42 }
  0xaf   :  { %170 = vrsqrt.f32 %v114_v43  ;;  %vm121_vm4 = vweird.f32 %v114_v43 }
  0xb5   :  { %v171_v44 = vpop.eup %170 }
  0xb6   :  { %v116_v45 = vmul.f32 %v171_v44, %v114_v43  ;;  %vm122_vm3 = vweird.f32 %v171_v44 }
  0xb7   :  { %vm123_vm5 = vmor %vm121_vm4, %vm122_vm3 }
  0xb8   :  { %v117_v46 = vmul.f32 %v171_v44, %v116_v45 }
  0xba   :  { %v118_v47 = vmul.f32 0.5, %v117_v46 }
  0xbc   :  { %v119_v48 = vsub.f32 1.5, %v118_v47 }
  0xbe   :  { %v120_v50 = vmul.f32 %v171_v44, %v119_v48 }
  0xc0   :  { %v124_v51 = vsel %vm123_vm5, %v171_v44, %v120_v50 }
  0xc1   :  { %v125_v52 = vmul.f32 %v124_v51, %v44_v49 }
  0xc3   :  { %v126_v53 = vperm.slane %v125_v52, 0 }
  0xc5   :  { %v127_v55 = vmul.f32 %v126_v53, %v105_v26 }
  0xc7   :  { %v129_v56 = vadd.f32 %v166_v54, %v127_v55 }
  0xc9   :  { %v130_v57 = vmax.f32 %v129_v56, 0.0 }
  0xcb   :  { %148 = vmatmul.f32.vlgmr.msra.gmra.mxu1 %v130_v57 }
 0x148   :  { %v149_v59 = vpop.f32.mrf.mxu1 }
 0x149   :  { %v150_v60 = vadd.f32 %v167_v58, %v149_v59 }
 0x14b   :  { %152 = vst [vmem:[%s255_s2] sm:$0xff] %v150_v60 }
 0x14c   :  { %157 = vsyncpa [#allocation3], 1 }
 0x14d   :  { %158 = vsyncpa [#allocation5], 1 }

</bundles_post_ra>
